<compile_context>
chip_gen: v5e
topology: v5e:2x2
jax: 0.10.0
libtpu: 0.0.40
codegen_flags: <defaults>
</compile_context>

<pallas_src>
import jax
import jax.numpy as jnp
from jax.experimental import pallas as pl
from jax.experimental.pallas import tpu as pltpu

_LANES = 128
_SUBLANES = 8
_DEFAULT_BLOCK_ROWS = 8192              # (8192, 128) f32 = 4 MiB per block
_VMEM_LIMIT_BYTES = 40 * 1024 * 1024    # < 64 MiB physical on v7x; ample on v5e/v6e
_MIN_PALLAS_ELEMS = 1024                # below this, fused jnp beats kernel launch


def _linear_kernel(wb_ref, x_ref, o_ref):
    # y = x * w + b : pure VPU FMA; w, b are SMEM scalars.
    w = wb_ref[0]
    b = wb_ref[1]
    o_ref[...] = x_ref[...] * w + b


def linear_forward(x, weight, bias, *,
                   block_rows=_DEFAULT_BLOCK_ROWS,
                   min_pallas_elems=_MIN_PALLAS_ELEMS):
    """x: (N, 1), weight: (1, 1), bias: (1,) -> (N, 1).  y = x @ W^T + b."""
    n, in_f = x.shape
    out_f = weight.shape[0]
    assert in_f == 1 and out_f == 1

    w = weight.reshape(()).astype(jnp.float32)
    b = bias.reshape(()).astype(jnp.float32)

    # Fast path: tiny batches (or non-f32 dtypes) -> one fused XLA elementwise op.
    if n < min_pallas_elems or x.dtype != jnp.float32:
        y = x.astype(jnp.float32) * w + b
        return y.astype(x.dtype).reshape(n, 1)

    # ---- zero-copy lane-dense layout -------------------------------------
    # (N, 1) -> (N,) -> (rows, 128) are layout-preserving reshapes (bitcasts).
    n_main = (n // _LANES) * _LANES         # bulk handled by Pallas
    rows = n_main // _LANES                 # >= 8 because n >= min_pallas_elems

    # Block rows: multiple of 8 sublanes, capped at what the input actually has.
    brows = min(block_rows, ((rows + _SUBLANES - 1) // _SUBLANES) * _SUBLANES)
    brows = max(brows, _SUBLANES)
    num_blocks = pl.cdiv(rows, brows)       # boundary block is masked by Pallas

    x_flat = x.reshape(-1)
    x_main = x_flat if n_main == n else x_flat[:n_main]
    x2d = x_main.reshape(rows, _LANES)

    wb = jnp.stack([w, b])                  # single (2,) f32 SMEM scalar vector

    y2d = pl.pallas_call(
        _linear_kernel,
        out_shape=jax.ShapeDtypeStruct((rows, _LANES), jnp.float32),
        grid=(num_blocks,),
        in_specs=[
            pl.BlockSpec(memory_space=pltpu.MemorySpace.SMEM),   # (w, b) scalars
            pl.BlockSpec((brows, _LANES), lambda i: (i, 0)),     # x slab
        ],
        out_specs=pl.BlockSpec((brows, _LANES), lambda i: (i, 0)),
        compiler_params=pltpu.CompilerParams(
            dimension_semantics=("parallel",),   # shard stream across TCs on v7x
            vmem_limit_bytes=_VMEM_LIMIT_BYTES,
        ),
    )(wb, x2d)

    y_main = y2d.reshape(n_main)
    if n_main == n:
        return y_main.reshape(n, 1)          # common case: fully zero-copy

    # < 128 leftover elements: one tiny fused jnp op + concat (O(N) once,
    # only taken when N is not a multiple of 128).
    y_tail = x_flat[n_main:] * w + b
    return jnp.concatenate([y_main, y_tail]).reshape(n, 1)


if __name__ == "__main__":
    key = jax.random.PRNGKey(0)
    kx1, kx2, kx3, kx4, kw, kb = jax.random.split(key, 6)

    # Deterministic parameters, same shapes as nn.Linear(1, 1, bias=True).
    weight = jax.random.uniform(kw, (1, 1), jnp.float32, minval=-1.0, maxval=1.0)
    bias = jax.random.uniform(kb, (1,), jnp.float32, minval=-1.0, maxval=1.0)

    def reference(x):
        return x @ weight.T + bias

    ok = True

    # 1) Tiny batch (8, 1): fused-jnp fast path.
    x1 = jax.random.normal(kx1, (8, 1), jnp.float32)
    y1 = jax.block_until_ready(linear_forward(x1, weight, bias))
    ok &= (y1.shape == (8, 1)) and bool(jnp.allclose(y1, reference(x1), atol=1e-6, rtol=1e-6))

    # 2) Small non-multiple-of-128 batch (300, 1): fast path.
    x2 = jax.random.normal(kx2, (300, 1), jnp.float32)
    y2 = jax.block_until_ready(linear_forward(x2, weight, bias))
    ok &= (y2.shape == (300, 1)) and bool(jnp.allclose(y2, reference(x2), atol=1e-6, rtol=1e-6))

    # 3) Multiple-of-128 batch (2048, 1): zero-copy Pallas path; small block_rows
    #    forces a 2-step grid to exercise the pipeline.
    x3 = jax.random.normal(kx3, (2048, 1), jnp.float32)
    y3 = jax.block_until_ready(linear_forward(x3, weight, bias, block_rows=8))
    ok &= (y3.shape == (2048, 1)) and bool(jnp.allclose(y3, reference(x3), atol=1e-6, rtol=1e-6))

    # 4) Non-multiple-of-128 batch (2085, 1): Pallas bulk + jnp tail.
    x4 = jax.random.normal(kx4, (2085, 1), jnp.float32)
    y4 = jax.block_until_ready(linear_forward(x4, weight, bias))
    ok &= (y4.shape == (2085, 1)) and bool(jnp.allclose(y4, reference(x4), atol=1e-6, rtol=1e-6))

    assert ok
    print("KERNEL_OK")
</pallas_src>

<mosaic_0001>
module attributes {stable_mosaic.version = 11 : i64} {
  func.func @_linear_kernel(%arg0: i32, %arg1: memref<2xf32, #tpu.memory_space<smem>>, %arg2: memref<8x128xf32, #tpu.memory_space<vmem>>, %arg3: memref<8x128xf32, #tpu.memory_space<vmem>>) attributes {dimension_semantics = [#tpu.dimension_semantics<parallel>], iteration_bounds = array<i64: 2>, scalar_prefetch = 0 : i64, scratch_operands = 0 : i64, tpu.core_type = #tpu.core_type<tc>, window_params = [{transform_indices = @transform_0, window_bounds = array<i64: 2>}, {transform_indices = @transform_1, window_bounds = array<i64: 8, 128>}, {transform_indices = @transform_2, window_bounds = array<i64: 8, 128>}]} {
    %c0 = arith.constant 0 : index
    %0 = memref.load %arg1[%c0] : memref<2xf32, #tpu.memory_space<smem>>
    %c1 = arith.constant 1 : index
    %1 = memref.load %arg1[%c1] : memref<2xf32, #tpu.memory_space<smem>>
    %c0_0 = arith.constant 0 : index
    %c0_1 = arith.constant 0 : index
    %2 = vector.load %arg2[%c0_0, %c0_1] : memref<8x128xf32, #tpu.memory_space<vmem>>, vector<8x128xf32>
    %3 = vector.broadcast %0 : f32 to vector<8x128xf32>
    %4 = arith.mulf %2, %3 : vector<8x128xf32>
    %5 = vector.broadcast %1 : f32 to vector<8x128xf32>
    %6 = arith.addf %4, %5 : vector<8x128xf32>
    %c0_2 = arith.constant 0 : index
    %c0_3 = arith.constant 0 : index
    %7 = vector.load %arg3[%c0_2, %c0_3] : memref<8x128xf32, #tpu.memory_space<vmem>>, vector<8x128xf32>
    tpu.vector_store %arg3[%c0_2, %c0_3], %6 {strides = array<i32>} : memref<8x128xf32, #tpu.memory_space<vmem>>, vector<8x128xf32>,
    return
  }
  func.func @transform_0(%arg0: i32) -> i32 {
    %c0_i32 = arith.constant 0 : i32
    %c0_i32_0 = arith.constant 0 : i32
    return %c0_i32 : i32
  }
  func.func @transform_1(%arg0: i32) -> (i32, i32) {
    %c0_i32 = arith.constant 0 : i32
    %c0_i32_0 = arith.constant 0 : i32
    return %arg0, %c0_i32 : i32, i32
  }
  func.func @transform_2(%arg0: i32) -> (i32, i32) {
    %c0_i32 = arith.constant 0 : i32
    %c0_i32_0 = arith.constant 0 : i32
    return %arg0, %c0_i32 : i32, i32
  }
}

</mosaic_0001>

<bundles_post_ra>
// kernel: tpu_custom_call.1
= control target key start
LH: loop header
LB: loop body
LE: loop exit
PB: predicated region body
PF: predicated region fallthrough
CT: control target
= control target key end

     0   :  { %7 = vsyncpa [#allocation5], 0  ;;  %s624_s0 = inlined_call_operand.hbm [shape: f32[2], index: 0, kind: input, shape index: {}]   ;;  %s625_s1 = inlined_call_operand.hbm [shape: f32[16,128], index: 1, kind: input, shape index: {}]   ;;  %s626_s2 = inlined_call_operand.hbm [shape: f32[16,128], index: 2, kind: output, shape index: {}]  }
   0x1   :  { %8 = vsyncpa [#allocation3], 0 }
   0x2   :  { %10 = vsyncpa [#allocation3 + $0x1], 0 }
   0x3   :  { %11 = vsyncpa [#allocation4], 0 }
   0x4   :  { %13 = vsyncpa [#allocation4 + $0x1], 0  ;;  %s486_s9 = smov 0   ;;  %s488_s10 = smov 0  }
   0x5   :  { %s490_s11 = smov 0   ;;  %s492_s12 = smov 0  }
   0x6 LB: > { %s507_s13 = sadd.s32 4294967295, %s468_s12   ;;  %s281_s14 = sadd.s32 4294967294, %s468_s12   ;;  %s468_s12 = sphi %s492_s12, %s636_s12   ;;  %s464_s11 = sphi %s490_s11, %s635_s11   ;;  %s460_s10 = sphi %s488_s10, %s634_s10   ;;  %s456_s9 = sphi %s486_s9, %s633_s9  }
   0x7   : > { %p60_p0 = scmp.ne.s32.totalorder %s460_s10, %s456_s9  ;;  %p61_p1 = scmp.eq.s32.totalorder %s507_s13, 0 }
   0x8   : > { %p84_p2 = scmp.eq.s32.totalorder %s507_s13, 1  ;;  %p90_p3 = scmp.eq.s32.totalorder %s281_s14, 1 }
   0x9   : > { %p516_p4 = por %p61_p1, %p60_p0  ;;  %p282_p5 = scmp.ge.s32.totalorder %s468_s12, 1 }
   0xa   : > { %p521_p6 = por %p90_p3, %p60_p0  ;;  %p97_p7 = scmp.lt.s32.totalorder %s468_s12, 3 }
   0xb   : > { %s109_s19 = sshll.u32 %s624_s0, 4  ;;  %s537_s21 = sadd.s32 1, %s468_s12   ;;  %s110_s19 = int_to_ptr.hbm [resolvable:$true] %s109_s19 }
   0xc   : > { %p529_p8 = pnand %p282_p5, %p97_p7  ;;  %s44_s22 = ssub.s32 %s468_s12, %s537_s21 }
   0xd   : > { %p45_p12 = scmp.eq.s32.totalorder %s44_s22, 0  ;;  %s47_s23 = sadd.s32 1, %s464_s11 }
   0xe   : > { %p304_p10 = pneg %p529_p8  ;;  %p54_p13 = scmp.ne.s32.totalorder %s464_s11, %s460_s10 }
   0xf   : > { %s470_s24 = smov [#allocation2]   ;;  %p55_p0 = scmp.eq.s32.totalorder %s468_s12, 0 }
  0x10   : > { %p305_p11 = pnand %p304_p10, %p61_p1  ;;  %p552_p3 = por %p84_p2, %p54_p13 }
  0x11   : > { %s547_s25 = scalar_select %p45_p12, %s464_s11, %s47_s23  }
  0x12   : > { %307 = dma.hbm_to_smem (!%p305_p11), %s110_s19, 16, %s470_s24, [#allocation5]  }
  0x13   : > { %s120_s27 = sand.u32 1, %s464_s11   ;;  %p56_p5 = por %p55_p0, %p54_p13 }
  0x14   : > { %p317_p7 = scmp.lt.s32.totalorder %s468_s12, 2  ;;  %s285_s28 = sshll.u32 %s120_s27, 3 }
  0x15   : > { %s286_s29 = sshll.u32 %s468_s12, 3  ;;  %s124_s6 = scalar_lea.vmem [#allocation6], %s285_s28 }
  0x16   : > { %s128_s4 = scalar_lea.hbm %s625_s1, %s286_s29  ;;  %s132_s7 = sshll.u32 %s124_s6, 4  ;;  %s133_s7 = int_to_ptr.vmem [resolvable:$true] %s132_s7 }
  0x17   : > { %s130_s5 = sshll.u32 %s128_s4, 4  ;;  %p562_p10 = pnand %p317_p7, %p56_p5  ;;  %s131_s5 = int_to_ptr.hbm [resolvable:$true] %s130_s5 }
  0x18   : > { %s121_s14 = scalar_lea.sflag [#allocation3], %s120_s27  ;;  %s368_s17 = sshra.s32 %s131_s5, 4  ;;  %s369_s17 = int_to_ptr.hbm [resolvable:$true] %s368_s17 }
  0x19   : > { %s370_s18 = scalar_lea.hbm %s369_s17, 8  ;;  %p372_p11 = pneg %p562_p10 }
  0x1a   : > { %p371_p2 = scmp.ne.s32.totalorder %s369_s17, %s370_s18  ;;  %s375_s23 = scalar_lea.hbm %s625_s1, 16 }
  0x1b   : > { %p376_p0 = scmp.lt.s32.totalorder %s369_s17, %s625_s1  ;;  %p377_p5 = scmp.lt.s32.totalorder %s375_s23, %s370_s18 }
  0x1c   : > { %p373_p12 = pnand %p372_p11, %p371_p2 }
  0x1d   : > { %p378_p7 = por %p377_p5, %p376_p0 }
  0x1e   : > { %p374_p13 = pneg %p373_p12 }
  0x20   : > { %p379_p9 = pnand %p378_p7, %p374_p13 }
  0x22   : > { %382 = shalt.err (!%p379_p9)
}
  0x23   : > { %311 = dma.hbm_to_vmem [thread:$0]  (!%p562_p10), %s131_s5, 128, %s133_s7, %s121_s14  }
  0x24   : > { %141 = sbr.rel (%p529_p8) target bundleno = 64 (0x40), region = 28 }
  0x29   : > { %443 = dma.done.wait (%p61_p1), [#allocation5], 16  }
  0x2a   : > { %445 = vsyncadd (%p61_p1), [#allocation5], 4294967280  ;;  %s583_s27 = sand.u32 1, %s460_s10  }
  0x2b   : > { %s289_s29 = sshll.u32 %s583_s27, 3  ;;  %s149_s30 = scalar_lea.sflag [#allocation3], %s583_s27 }
  0x2c   : > { %s152_s3 = scalar_lea.vmem [#allocation6], %s289_s29 }
  0x2d   : > { %447 = dma.done.wait (%p516_p4), %s149_s30, 128  }
  0x2e   : > { %449 = vsyncadd (%p516_p4), %s149_s30, 4294967168 }
  0x2f   : > { %158 = sfence }
  0x30   : > { %s175_s20 = sld [smem:[#allocation2]]  ;;  %s293_s5 = sshll.u32 %s507_s13, 3  ;;  %v177_v0 = vld [vmem:[%s152_s3] sm:$0xff] }
  0x31   : > { %s291_s4 = sld [smem:[#allocation2 + $0x1]]  ;;  %s194_s8 = scalar_lea.hbm %s626_s2, %s293_s5 }
  0x32   : > { %s174_s14 = scalar_lea.vmem [#allocation7], %s289_s29  ;;  %s198_s18 = sshll.u32 %s194_s8, 4  ;;  %s199_s18 = int_to_ptr.hbm [resolvable:$true] %s198_s18 }
  0x33   : > { %s196_s17 = sshll.u32 %s174_s14, 4  ;;  %s184_s15 = scalar_lea.sflag [#allocation4], %s583_s27  ;;  %s197_s17 = int_to_ptr.vmem [resolvable:$true] %s196_s17 }
  0x34   : > { %s412_s19 = sshra.s32 %s199_s18, 4  ;;  %s418_s24 = scalar_lea.hbm %s626_s2, 16  ;;  %s413_s19 = int_to_ptr.hbm [resolvable:$true] %s412_s19 }
  0x35   : > { %s414_s13 = scalar_lea.hbm %s413_s19, 8  ;;  %p419_p9 = scmp.lt.s32.totalorder %s413_s19, %s626_s2 }
  0x36   : > { %v178_v1 = vstv %s175_s20  ;;  %p415_p1 = scmp.ne.s32.totalorder %s413_s19, %s414_s13  ;;  %p420_p10 = scmp.lt.s32.totalorder %s418_s24, %s414_s13 }
  0x37   : > { %v179_v2 = vmul.f32 %v178_v1, %v177_v0  ;;  %v180_v3 = vstv %s291_s4 }
  0x38   : > { %p416_p4 = pnand %p415_p1, %p552_p3  ;;  %p421_p2 = por %p420_p10, %p419_p9 }
  0x39   : > { %v181_v4 = vadd.f32 %v180_v3, %v179_v2 }
  0x3a   : > { %p417_p8 = pneg %p416_p4 }
  0x3b   : > { %182 = vst [vmem:[%s174_s14] sm:$0xff] %v181_v4 }
  0x3c   : > { %p422_p11 = pnand %p421_p2, %p417_p8 }
  0x3e   : > { %425 = shalt.err (!%p422_p11)
}
  0x3f   : > { %302 = dma.vmem_to_hbm [thread:$0]  (%p552_p3), %s197_s17, 128, %s199_s18, %s184_s15  }
  0x40 PF: > { %s210_s27 = sand.u32 1, %s456_s9   ;;  %p632_p12 = scmp.ge.s32.totalorder %s468_s12, 2 }
  0x41   : > { %s211_s30 = scalar_lea.sflag [#allocation4], %s210_s27 }
  0x42   : > { %p313_p13 = pnand %p632_p12, %p521_p6 }
  0x44   : > { %p314_p0 = pneg %p313_p13 }
  0x46   : > { %451 = dma.done.wait (%p314_p0), %s211_s30, 128  }
  0x47   : > { %453 = vsyncadd (%p314_p0), %s211_s30, 4294967168  ;;  %p16_p5 = scmp.ge.s32.totalorder %s537_s21, 4   ;;  %s633_s9 = smov %s460_s10 }
  0x48   : > { %s634_s10 = smov %s464_s11  ;;  %s635_s11 = smov %s547_s25 }
  0x49   : > { %s636_s12 = smov %s537_s21  ;;  %18 = sbr.rel (!%p16_p5) target bundleno = 6 (0x6), region = 78 }
  0x4e   :  { %217 = vsyncpa [#allocation3], 1 }
  0x4f   :  { %219 = vsyncpa [#allocation3 + $0x1], 1 }
  0x50   :  { %220 = vsyncpa [#allocation4], 1 }
  0x51   :  { %222 = vsyncpa [#allocation4 + $0x1], 1 }
  0x52   :  { %223 = vsyncpa [#allocation5], 1 }
  0x53   :  { %225 = vsyncpa [#allocation5 + $0x1], 1 }

</bundles_post_ra>
